<compile_context>
chip_gen: v7x
topology: tpu7x:2x2x1
jax: 0.10.0
libtpu: 0.0.40
codegen_flags: <defaults>
</compile_context>

<pallas_src>
import functools

import jax
import jax.numpy as jnp
from jax import lax
from jax.experimental import pallas as pl
from jax.experimental.pallas import tpu as pltpu


# ---------------------------------------------------------------------------
# Hardware-aware VMEM budgets.
# ---------------------------------------------------------------------------
def _vmem_capacity_bytes():
    try:
        cap = int(pltpu.get_tpu_info().vmem_capacity_bytes)
        return int(min(max(cap, 32 << 20), 128 << 20))
    except Exception:
        return 64 << 20          # conservative default (v7x per-core VMEM)


def _budgets():
    cap = _vmem_capacity_bytes()
    usable = max(cap - (8 << 20), 24 << 20)          # headroom for Mosaic
    slab = max(2 << 20, min(16 << 20, cap // 10))    # per-block streaming slab
    return usable, slab


def _vmem_limit(nbytes, usable):
    return int(min(max(nbytes + (8 << 20), 32 << 20), usable))


def _pick_hw_tile(hw, row_bytes, budget):
    """Largest lane-dense HW block (full extent, or a multiple of 128) whose
    (row_bytes * tile) slab fits the per-block budget."""
    if hw * row_bytes <= budget or hw <= 128:
        return int(hw)
    t = max(128, (budget // row_bytes) // 128 * 128)
    hw_ceil = -(-hw // 128) * 128
    return int(min(t, hw_ceil))


# ---------------------------------------------------------------------------
# Gate MLP helpers (f32).  M = 1 row per sample, so tiny C*hidden skips the
# MXU entirely (VALU broadcast + reduce); big C/hidden uses the MXU.
# ---------------------------------------------------------------------------
def _small_matmul(a, b):
    """a: (M, K) f32, b: (K, N) f32 -> (M, N) f32."""
    if b.shape[0] * b.shape[1] <= 128 * 128:
        return jnp.sum(a[:, :, None] * b[None, :, :], axis=1)
    return jnp.dot(a, b, preferred_element_type=jnp.float32)


def _gate_mlp(mean, w1t, w2t):
    """sigmoid(silu(mean @ W1^T) @ W2^T); mean: (M, C) f32 -> (M, C) f32."""
    h = _small_matmul(mean, w1t)            # Linear(dim -> hidden, no bias)
    h = h * jax.nn.sigmoid(h)               # SiLU
    return jax.nn.sigmoid(_small_matmul(h, w2t))  # Linear(hidden -> dim) + Sigmoid


# ---------------------------------------------------------------------------
# Fused fast path: one (1, C, HW) sample slab resident in VMEM per grid step.
# ---------------------------------------------------------------------------
def _fused_kernel(x_ref, w1t_ref, w2t_ref, o_ref, *, hw):
    # x_ref / o_ref: (1, C, HW) native dtype; weights f32.
    mean = jnp.sum(x_ref[...].astype(jnp.float32), axis=-1) * (1.0 / hw)  # (1, C)
    gate = _gate_mlp(mean, w1t_ref[...], w2t_ref[...])                    # (1, C)
    # Native-dtype multiply (bf16 VPU on v6e/v7x); gate error << bf16 ULP.
    o_ref[...] = x_ref[...] * gate.astype(o_ref.dtype)[:, :, None]


# ---------------------------------------------------------------------------
# Streaming Phase 1: per-sample spatial sum over HW tiles -> gate MLP at the
# last tile.  Tail masking is gated on the final tile only.
# ---------------------------------------------------------------------------
def _sum_gate_kernel(x_ref, w1t_ref, w2t_ref, gate_ref, acc_ref,
                     *, hw, tile_hw, tail_rem):
    hw_i = pl.program_id(1)
    last = pl.num_programs(1) - 1

    @pl.when(hw_i == 0)
    def _init():
        acc_ref[...] = jnp.zeros_like(acc_ref)

    xb = x_ref[...].astype(jnp.float32)                       # (1, C, tile_hw)

    if tail_rem == tile_hw:                                    # HW % tile == 0
        acc_ref[...] += jnp.sum(xb, axis=-1)                   # (1, C)
    else:
        # Steady-state tiles: no mask work at all.
        @pl.when(hw_i != last)
        def _steady():
            acc_ref[...] += jnp.sum(xb, axis=-1)

        # Only the final (partial) tile pays for the iota/compare/select.
        @pl.when(hw_i == last)
        def _tail():
            col = lax.broadcasted_iota(jnp.int32, xb.shape, 2)
            acc_ref[...] += jnp.sum(jnp.where(col < tail_rem, xb, 0.0), axis=-1)

    @pl.when(hw_i == last)
    def _finalize():
        mean = acc_ref[...] * (1.0 / hw)                       # (1, C) f32
        gate = _gate_mlp(mean, w1t_ref[...], w2t_ref[...])     # (1, C) f32
        gate_ref[...] = gate.astype(gate_ref.dtype)[:, :, None]  # (1, C, 1)


# ---------------------------------------------------------------------------
# Streaming Phase 2: tiled elementwise multiply in the native dtype.
# ---------------------------------------------------------------------------
def _scale_kernel(x_ref, gate_ref, o_ref, *, tile_hw, tail_rem):
    # x_ref: (1, C, tile_hw) native; gate_ref: (1, C, 1) native.
    xb = x_ref[...]
    g = gate_ref[...]
    if tail_rem == tile_hw:
        o_ref[...] = xb * g
    else:
        hw_i = pl.program_id(1)
        last = pl.num_programs(1) - 1

        @pl.when(hw_i != last)
        def _steady():
            o_ref[...] = xb * g

        # Zero the padded region of the last partial tile so nothing depends
        # on undefined padded reads (NaN-trap / interpret-mode safe).
        @pl.when(hw_i == last)
        def _tail():
            prod = xb * g
            col = lax.broadcasted_iota(jnp.int32, prod.shape, 2)
            o_ref[...] = jnp.where(col < tail_rem, prod, jnp.zeros_like(prod))


# ---------------------------------------------------------------------------
# Wrapper.
# ---------------------------------------------------------------------------
def squeeze_excitation(x_nchw, w1, w2, *, force_two_phase=False,
                       hw_tile_override=None):
    """x_nchw: (B, C, H, W) any float dtype; w1: (hidden, C); w2: (C, hidden)."""
    B, C, H, W = x_nchw.shape
    hidden = w1.shape[0]
    HW = H * W

    x_flat = x_nchw.reshape(B, C, HW)             # native dtype, no upcast copy
    dtype = x_flat.dtype
    itemsize = jnp.dtype(dtype).itemsize

    w1t = jnp.asarray(w1, jnp.float32).T          # (C, hidden)
    w2t = jnp.asarray(w2, jnp.float32).T          # (hidden, C)

    usable, slab = _budgets()
    w_bytes = 2 * 2 * C * hidden * 4              # both weights, double-buffered

    # ----- Fused VMEM-resident fast path: x crosses HBM exactly twice. -----
    # Per-core need: double-buffered in + out sample slabs, an f32 reduce
    # temporary, one native-dtype product temporary, weights, margin.
    fused_need = 5 * C * HW * itemsize + 4 * C * HW + w_bytes + (2 << 20)
    if not force_two_phase and fused_need <= usable:
        out_flat = pl.pallas_call(
            functools.partial(_fused_kernel, hw=HW),
            out_shape=jax.ShapeDtypeStruct((B, C, HW), dtype),
            grid_spec=pltpu.PrefetchScalarGridSpec(
                num_scalar_prefetch=0,
                grid=(B,),
                in_specs=[
                    pl.BlockSpec((1, C, HW), lambda b: (b, 0, 0)),
                    pl.BlockSpec((C, hidden), lambda b: (0, 0)),
                    pl.BlockSpec((hidden, C), lambda b: (0, 0)),
                ],
                out_specs=pl.BlockSpec((1, C, HW), lambda b: (b, 0, 0)),
            ),
            compiler_params=pltpu.CompilerParams(
                dimension_semantics=("parallel",),
                vmem_limit_bytes=_vmem_limit(fused_need, usable)),
            cost_estimate=pl.CostEstimate(
                flops=2 * B * C * HW + 4 * B * C * hidden,
                transcendentals=B * (2 * hidden + C),
                bytes_accessed=2 * B * C * HW * itemsize + 2 * C * hidden * 4),
        )(x_flat, w1t, w2t)
        return out_flat.reshape(B, C, H, W)

    # ----- Streaming two-phase path (large feature maps). -----
    if hw_tile_override is not None:
        assert hw_tile_override == HW or hw_tile_override % 128 == 0
        tile_hw = int(hw_tile_override)
    else:
        tile_hw = _pick_hw_tile(HW, C * itemsize, slab)
    n_hw = pl.cdiv(HW, tile_hw)
    tail_rem = HW - (n_hw - 1) * tile_hw          # static Python int

    need1 = (2 * C * tile_hw * itemsize + C * tile_hw * 4
             + w_bytes + 2 * C * itemsize + C * 4 + (1 << 20))
    need2 = 4 * C * tile_hw * itemsize + 2 * C * itemsize + (1 << 20)

    # Phase 1: per-sample gate, batch axis parallel across cores.
    gate = pl.pallas_call(
        functools.partial(_sum_gate_kernel, hw=HW, tile_hw=tile_hw,
                          tail_rem=tail_rem),
        out_shape=jax.ShapeDtypeStruct((B, C, 1), dtype),
        grid_spec=pltpu.PrefetchScalarGridSpec(
            num_scalar_prefetch=0,
            grid=(B, n_hw),
            in_specs=[
                pl.BlockSpec((1, C, tile_hw), lambda b, h: (b, 0, h)),
                pl.BlockSpec((C, hidden), lambda b, h: (0, 0)),
                pl.BlockSpec((hidden, C), lambda b, h: (0, 0)),
            ],
            out_specs=pl.BlockSpec((1, C, 1), lambda b, h: (b, 0, 0)),
            scratch_shapes=[pltpu.VMEM((1, C), jnp.float32)],
        ),
        compiler_params=pltpu.CompilerParams(
            dimension_semantics=("parallel", "arbitrary"),
            vmem_limit_bytes=_vmem_limit(need1, usable)),
        cost_estimate=pl.CostEstimate(
            flops=B * C * HW + 4 * B * C * hidden,
            transcendentals=B * (2 * hidden + C),
            bytes_accessed=B * C * HW * itemsize + B * C * itemsize),
    )(x_flat, w1t, w2t)

    # Phase 2: out = x * gate, native dtype, fully parallel grid.
    out_flat = pl.pallas_call(
        functools.partial(_scale_kernel, tile_hw=tile_hw, tail_rem=tail_rem),
        out_shape=jax.ShapeDtypeStruct((B, C, HW), dtype),
        grid_spec=pltpu.PrefetchScalarGridSpec(
            num_scalar_prefetch=0,
            grid=(B, n_hw),
            in_specs=[
                pl.BlockSpec((1, C, tile_hw), lambda b, h: (b, 0, h)),
                pl.BlockSpec((1, C, 1), lambda b, h: (b, 0, 0)),
            ],
            out_specs=pl.BlockSpec((1, C, tile_hw), lambda b, h: (b, 0, h)),
        ),
        compiler_params=pltpu.CompilerParams(
            dimension_semantics=("parallel", "parallel"),
            vmem_limit_bytes=_vmem_limit(need2, usable)),
        cost_estimate=pl.CostEstimate(
            flops=B * C * HW,
            transcendentals=0,
            bytes_accessed=2 * B * C * HW * itemsize + B * C * itemsize),
    )(x_flat, gate)

    return out_flat.reshape(B, C, H, W)


# ---------------------------------------------------------------------------
# Pure-JAX reference (matches the PyTorch module).
# ---------------------------------------------------------------------------
def _reference(x, w1, w2):
    xf = x.astype(jnp.float32)
    mean = jnp.mean(xf, axis=(2, 3))                      # (B, C)
    h = mean @ jnp.asarray(w1, jnp.float32).T
    h = h * jax.nn.sigmoid(h)                             # SiLU
    g = jax.nn.sigmoid(h @ jnp.asarray(w2, jnp.float32).T)
    return (xf * g[:, :, None, None]).astype(x.dtype)


if __name__ == "__main__":
    root = jax.random.PRNGKey(0)

    def run_case(case_key, B, C, H, W, dtype, *, force_two_phase=False,
                 hw_tile_override=None, tol=1e-5):
        hidden = max(1, int(C * 0.25))
        kx, k1, k2 = jax.random.split(case_key, 3)
        x = jax.random.normal(kx, (B, C, H, W), dtype=jnp.float32).astype(dtype)
        w1 = jax.random.normal(k1, (hidden, C), dtype=jnp.float32) * 0.5
        w2 = jax.random.normal(k2, (C, hidden), dtype=jnp.float32) * 0.5

        out = squeeze_excitation(x, w1, w2, force_two_phase=force_two_phase,
                                 hw_tile_override=hw_tile_override)
        out = jax.block_until_ready(out)

        ref = _reference(x, w1, w2)
        assert out.shape == x.shape and out.dtype == x.dtype
        ok = jnp.allclose(out.astype(jnp.float32), ref.astype(jnp.float32),
                          atol=tol, rtol=tol)
        assert bool(ok), f"mismatch vs reference for {(B, C, H, W)} {dtype}"

    keys = jax.random.split(root, 4)
    # 1) Canonical small case (module defaults) -> fused fast path, f32.
    run_case(keys[0], 2, 4, 16, 16, jnp.float32, tol=1e-5)
    # 2) Fused fast path with native bf16 streaming + bf16 multiply.
    run_case(keys[1], 2, 8, 9, 9, jnp.bfloat16, tol=2e-2)
    # 3) Streaming two-phase path with HW tail masking (HW=400, tile=128).
    run_case(keys[2], 2, 8, 20, 20, jnp.float32, force_two_phase=True,
             hw_tile_override=128, tol=1e-5)
    # 4) Streaming two-phase path, exact tiling (HW=256, tile=128).
    run_case(keys[3], 2, 4, 16, 16, jnp.float32, force_two_phase=True,
             hw_tile_override=128, tol=1e-5)

    print("KERNEL_OK")
</pallas_src>

<mosaic_0001>
module attributes {stable_mosaic.version = 11 : i64} {
  func.func @_fused_kernel(%arg0: i32, %arg1: memref<1x4x256xf32, #tpu.memory_space<vmem>>, %arg2: memref<4x1xf32, #tpu.memory_space<vmem>>, %arg3: memref<1x4xf32, #tpu.memory_space<vmem>>, %arg4: memref<1x4x256xf32, #tpu.memory_space<vmem>>) attributes {dimension_semantics = [#tpu.dimension_semantics<parallel>], iteration_bounds = array<i64: 2>, scalar_prefetch = 0 : i64, scratch_operands = 0 : i64, tpu.core_type = #tpu.core_type<tc>, window_params = [{transform_indices = @transform_0, window_bounds = array<i64: 1, 4, 256>}, {pipeline_mode = #tpu.pipeline_mode<synchronous>, transform_indices = @transform_1, window_bounds = array<i64: 4, 1>}, {pipeline_mode = #tpu.pipeline_mode<synchronous>, transform_indices = @transform_2, window_bounds = array<i64: 1, 4>}, {transform_indices = @transform_3, window_bounds = array<i64: 1, 4, 256>}]} {
    %c0 = arith.constant 0 : index
    %c0_0 = arith.constant 0 : index
    %c0_1 = arith.constant 0 : index
    %0 = vector.load %arg1[%c0, %c0_0, %c0_1] : memref<1x4x256xf32, #tpu.memory_space<vmem>>, vector<1x4x256xf32>
    %cst = arith.constant dense<0.000000e+00> : vector<1x4xf32>
    %1 = vector.multi_reduction <add>, %0, %cst [2] : vector<1x4x256xf32> to vector<1x4xf32>
    %cst_2 = arith.constant 3.906250e-03 : f32
    %2 = vector.broadcast %cst_2 : f32 to vector<1x4xf32>
    %3 = arith.mulf %1, %2 : vector<1x4xf32>
    %c0_3 = arith.constant 0 : index
    %c0_4 = arith.constant 0 : index
    %4 = vector.load %arg2[%c0_3, %c0_4] : memref<4x1xf32, #tpu.memory_space<vmem>>, vector<4x1xf32>
    %c0_5 = arith.constant 0 : index
    %c0_6 = arith.constant 0 : index
    %5 = vector.load %arg3[%c0_5, %c0_6] : memref<1x4xf32, #tpu.memory_space<vmem>>, vector<1x4xf32>
    %6 = vector.shape_cast %3 : vector<1x4xf32> to vector<1x4x1xf32>
    %7 = vector.shape_cast %4 : vector<4x1xf32> to vector<1x4x1xf32>
    %8 = arith.mulf %6, %7 : vector<1x4x1xf32>
    %cst_7 = arith.constant dense<0.000000e+00> : vector<1x1xf32>
    %9 = vector.multi_reduction <add>, %8, %cst_7 [1] : vector<1x4x1xf32> to vector<1x1xf32>
    %10 = arith.negf %9 : vector<1x1xf32>
    %11 = math.exp %10 : vector<1x1xf32>
    %cst_8 = arith.constant 1.000000e+00 : f32
    %12 = vector.broadcast %cst_8 : f32 to vector<1x1xf32>
    %13 = arith.addf %12, %11 : vector<1x1xf32>
    %14 = arith.divf %12, %13 : vector<1x1xf32>
    %15 = arith.mulf %9, %14 : vector<1x1xf32>
    %16 = vector.shape_cast %15 : vector<1x1xf32> to vector<1x1x1xf32>
    %17 = vector.shape_cast %5 : vector<1x4xf32> to vector<1x1x4xf32>
    %18 = vector.broadcast %16 : vector<1x1x1xf32> to vector<1x1x4xf32>
    %19 = arith.mulf %18, %17 : vector<1x1x4xf32>
    %cst_9 = arith.constant dense<0.000000e+00> : vector<1x4xf32>
    %20 = vector.multi_reduction <add>, %19, %cst_9 [1] : vector<1x1x4xf32> to vector<1x4xf32>
    %21 = arith.negf %20 : vector<1x4xf32>
    %22 = math.exp %21 : vector<1x4xf32>
    %cst_10 = arith.constant 1.000000e+00 : f32
    %23 = vector.broadcast %cst_10 : f32 to vector<1x4xf32>
    %24 = arith.addf %23, %22 : vector<1x4xf32>
    %25 = arith.divf %23, %24 : vector<1x4xf32>
    %c0_11 = arith.constant 0 : index
    %c0_12 = arith.constant 0 : index
    %c0_13 = arith.constant 0 : index
    %26 = vector.load %arg1[%c0_11, %c0_12, %c0_13] : memref<1x4x256xf32, #tpu.memory_space<vmem>>, vector<1x4x256xf32>
    %27 = vector.shape_cast %25 : vector<1x4xf32> to vector<1x4x1xf32>
    %28 = vector.broadcast %27 : vector<1x4x1xf32> to vector<1x4x256xf32>
    %29 = arith.mulf %26, %28 : vector<1x4x256xf32>
    %c0_14 = arith.constant 0 : index
    %c0_15 = arith.constant 0 : index
    %c0_16 = arith.constant 0 : index
    %30 = vector.load %arg4[%c0_14, %c0_15, %c0_16] : memref<1x4x256xf32, #tpu.memory_space<vmem>>, vector<1x4x256xf32>
    tpu.vector_store %arg4[%c0_14, %c0_15, %c0_16], %29 {strides = array<i32>} : memref<1x4x256xf32, #tpu.memory_space<vmem>>, vector<1x4x256xf32>,
    return
  }
  func.func @transform_0(%arg0: i32) -> (i32, i32, i32) {
    %c0_i32 = arith.constant 0 : i32
    %c0_i32_0 = arith.constant 0 : i32
    %c0_i32_1 = arith.constant 0 : i32
    return %arg0, %c0_i32, %c0_i32_0 : i32, i32, i32
  }
  func.func @transform_1(%arg0: i32) -> (i32, i32) {
    %c0_i32 = arith.constant 0 : i32
    %c0_i32_0 = arith.constant 0 : i32
    %c0_i32_1 = arith.constant 0 : i32
    return %c0_i32, %c0_i32_0 : i32, i32
  }
  func.func @transform_2(%arg0: i32) -> (i32, i32) {
    %c0_i32 = arith.constant 0 : i32
    %c0_i32_0 = arith.constant 0 : i32
    %c0_i32_1 = arith.constant 0 : i32
    return %c0_i32, %c0_i32_0 : i32, i32
  }
  func.func @transform_3(%arg0: i32) -> (i32, i32, i32) {
    %c0_i32 = arith.constant 0 : i32
    %c0_i32_0 = arith.constant 0 : i32
    %c0_i32_1 = arith.constant 0 : i32
    return %arg0, %c0_i32, %c0_i32_0 : i32, i32, i32
  }
}

</mosaic_0001>

<bundles_post_ra>
// kernel: tpu_custom_call.1
= control target key start
LH: loop header
LB: loop body
LE: loop exit
PB: predicated region body
PF: predicated region fallthrough
CT: control target
= control target key end

     0   :  { %8 = vsyncpa [#allocation3], 0  ;;  %s701_s0 = inlined_call_operand.hbm [shape: f32[2,4,256], index: 0, kind: input, shape index: {}]   ;;  %s702_s1 = inlined_call_operand.vmem [shape: f32[4,1], index: 1, kind: input, shape index: {}]   ;;  %s703_s2 = inlined_call_operand.vmem [shape: f32[1,4], index: 2, kind: input, shape index: {}]   ;;  %s704_s3 = inlined_call_operand.hbm [shape: f32[2,4,256], index: 3, kind: output, shape index: {}]  }
   0x1   :  { %10 = vsyncpa [#allocation3 + $0x1], 0 }
   0x2   :  { %11 = vsyncpa [#allocation4], 0 }
   0x3   :  { %13 = vsyncpa [#allocation4 + $0x1], 0  ;;  %s530_s12 = smov 0   ;;  %s532_s13 = smov 0  }
   0x4   :  { %s534_s14 = smov 0   ;;  %s536_s15 = smov 0  }
   0x5 LB: > { %s551_s16 = sadd.s32 4294967295, %s504_s15   ;;  %s332_s17 = sadd.s32 4294967294, %s504_s15   ;;  %s504_s15 = sphi %s536_s15, %s719_s15   ;;  %s500_s14 = sphi %s534_s14, %s718_s14   ;;  %s496_s13 = sphi %s532_s13, %s717_s13   ;;  %s492_s12 = sphi %s530_s12, %s716_s12  }
   0x6   : > { %s555_s18 = sadd.s32 1, %s504_s15   ;;  %s26_s19 = sadd.s32 1, %s500_s14 }
   0x7   : > { %s23_s20 = ssub.s32 %s504_s15, %s555_s18  ;;  %p33_p0 = scmp.ne.s32.totalorder %s500_s14, %s496_s13 }
   0x8   : > { %p24_p1 = scmp.eq.s32.totalorder %s23_s20, 0  ;;  %p34_p2 = scmp.eq.s32.totalorder %s504_s15, 0 }
   0x9   : > { %p39_p3 = scmp.ne.s32.totalorder %s496_s13, %s492_s12  ;;  %p40_p4 = scmp.eq.s32.totalorder %s551_s16, 0 }
   0xa   : > { %s567_s21 = scalar_select %p24_p1, %s500_s14, %s26_s19  }
   0xb   : > { %p569_p5 = por %p34_p2, %p33_p0  ;;  %p573_p6 = por %p40_p4, %p39_p3 }
   0xc   : > { %p105_p7 = scmp.eq.s32.totalorder %s551_s16, 1  ;;  %p111_p8 = scmp.eq.s32.totalorder %s332_s17, 1 }
   0xd   : > { %p362_p10 = scmp.lt.s32.totalorder %s504_s15, 2  ;;  %s137_s26 = sand.u32 1, %s500_s14  }
   0xe   : > { %p580_p11 = por %p105_p7, %p33_p0  ;;  %p584_p12 = por %p111_p8, %p39_p3 }
   0xf   : > { %s348_s27 = sshll.u32 %s504_s15, 7  ;;  %s335_s28 = sshll.u32 %s137_s26, 3 }
  0x10   : > { %s708_s24 = scalar_select %p580_p11, 1, 0 }
  0x11   : > { %s709_s25 = scalar_select %p584_p12, 1, 0 }
  0x12   : > { %s593_s4 = scalar_lea.hbm %s701_s0, %s348_s27  ;;  %s141_s5 = scalar_lea.vmem [#allocation2], %s335_s28 }
  0x13   : > { %s149_s6 = sshll.u32 %s141_s5, 4  ;;  %p597_p13 = pnand %p362_p10, %p569_p5  ;;  %s601_s6 = int_to_ptr.vmem [resolvable:$true] %s149_s6 }
  0x14   : > { %s138_s8 = scalar_lea.sflag [#allocation3], %s137_s26  ;;  %s408_s9 = scalar_lea.hbm %s593_s4, 128 }
  0x15   : > { %p409_p2 = scmp.ne.s32.totalorder %s593_s4, %s408_s9  ;;  %p410_p3 = pneg %p597_p13 }
  0x16   : > { %s413_s17 = scalar_lea.hbm %s701_s0, 256  ;;  %p414_p5 = scmp.lt.u32.totalorder %s593_s4, %s701_s0 }
  0x17   : > { %p411_p4 = pnand %p410_p3, %p409_p2  ;;  %p415_p8 = scmp.lt.u32.totalorder %s413_s17, %s408_s9 }
  0x18   : > { %p417_p9 = scmp.lt.u32.totalorder %s408_s9, %s593_s4 }
  0x19   : > { %p412_p7 = pneg %p411_p4  ;;  %p416_p10 = por %p415_p8, %p414_p5 }
  0x1b   : > { %p418_p0 = por %p417_p9, %p416_p10 }
  0x1d   : > { %p419_p1 = pnand %p418_p0, %p412_p7 }
  0x1f   : > { %422 = shalt.err (!%p419_p1)
}
  0x20   : > { %s423_s22 = scalar_lea.vmem %s601_s6, 128  ;;  %s506_s26 = smov [#allocation2]  }
  0x21   : > { %p424_p2 = scmp.ne.s32.totalorder %s601_s6, %s423_s22  ;;  %s428_s27 = sshll.u32 %s506_s26, 4  ;;  %s429_s27 = int_to_ptr.vmem [resolvable:$false] %s428_s27 }
  0x22   : > { %s430_s28 = scalar_lea.vmem %s429_s27, 256  ;;  %p431_p11 = scmp.lt.s32.totalorder %s601_s6, %s429_s27 }
  0x23   : > { %p426_p4 = pnand %p424_p2, %p410_p3  ;;  %p432_p5 = scmp.lt.s32.totalorder %s430_s28, %s423_s22 }
  0x25   : > { %p427_p12 = pneg %p426_p4  ;;  %p433_p8 = por %p432_p5, %p431_p11 }
  0x27   : > { %p434_p9 = pnand %p433_p8, %p427_p12 }
  0x29   : > { %437 = shalt.err (!%p434_p9)
}
  0x2a   : > { %357 = dma.hbm_to_vmem [thread:$0]  (!%p597_p13), %s593_s4, 128, %s601_s6, %s138_s8  }
  0x2b   : > { %p711_p0 = scmp.lt.s32.totalorder %s504_s15, 3  ;;  %p712_p1 = scmp.ge.s32.totalorder %s504_s15, 1 }
  0x2d   : > { %p155_p3 = pnand %p712_p1, %p711_p0 }
  0x2e   : > { %s635_s29 = sand.u32 (!%p155_p3), 1, %s496_s13  }
  0x2f   : > { %158 = sbr.rel (%p155_p3) target bundleno = 539 (0x21b), region = 32  ;;  %s339_s30 = sshll.u32 (!%p155_p3), %s635_s29, 3 }
  0x30   : > { %s161_s5 = scalar_lea.sflag (!%p155_p3), [#allocation3], %s635_s29  ;;  %s164_s7 = scalar_lea.vmem (!%p155_p3), [#allocation2], %s339_s30 }
  0x36   : > { %483 = dma.done.wait (%p573_p6), %s161_s5, 128  }
  0x37   : > { %485 = vsyncadd (%p573_p6), %s161_s5, 4294967168  ;;  %vm191_vm0 = vcmask 1043456   ;;  %v187_v0 = vld [vmem:[%s164_s7] sm:$0xff]  ;;  %v507_v5 = vmov 0   ;;  %vm201_vm1 = vcmask 3072   ;;  %v229_v28 = vlaneseq  ;;  %s349_s9 = sshll.u32 %s551_s16, 7 }
  0x38   : > { %v189_v1 = vcombine.high %v187_v0, %v187_v0  ;;  %v192_v2 = vsel %vm191_vm0, %v187_v0, 0.0  ;;  %398 = vset.pattern.permute.xlu0 %v507_v5  ;;  %v198_v6 = vld [vmem:[%s702_s1] sm:$0xf]  ;;  %v508_v33 = vmov 839922192   ;;  %s186_s10 = scalar_lea.vmem [#allocation5], %s339_s30  ;;  %s657_s20 = scalar_lea.hbm %s704_s3, %s349_s9 }
  0x39   : > { %v199_v22 = vld [vmem:[%s703_s2] sm:$0x1]  ;;  %v230_v29 = vshrl.u32 %v229_v28, 7  ;;  %v238_v34 = vunpack.c.l.s4 %v508_v33  ;;  %s262_s11 = sshll.u32 %s186_s10, 4  ;;  %s248_s22 = scalar_lea.sflag [#allocation4], %s635_s29  ;;  %s659_s11 = int_to_ptr.vmem [resolvable:$true] %s262_s11 }
  0x3a   : > { %v193_v3 = vsel %vm191_vm0, %v189_v1, 0.0  ;;  %s438_s26 = scalar_lea.vmem %s659_s11, 128  ;;  %p713_p11 = scmp.ne.s32.totalorder %s708_s24, 0 }
  0x3b   : > { %v194_v4 = vadd.f32 %v193_v3, %v192_v2  ;;  %v231_v30 = vsub.s32 0, %v230_v29  ;;  %v239_v35 = vunpack.c.0.s8 %v238_v34  ;;  %p439_p6 = scmp.ne.s32.totalorder %s659_s11, %s438_s26  ;;  %s509_s16 = smov [#allocation5]  }
  0x3c   : > { %s442_s27 = sshll.u32 %s509_s16, 4  ;;  %s443_s27 = int_to_ptr.vmem [resolvable:$false] %s442_s27 }
  0x3d   : > { %195 = vadd.xlane.f32.xlu0 %v194_v4  ;;  %v242_v36 = vsub.s32 %v239_v35, %v230_v29  ;;  %p440_p12 = pnand %p439_p6, %p713_p11  ;;  %s444_s28 = scalar_lea.vmem %s443_s27, 256 }
  0x3e   : > { %p445_p7 = scmp.lt.s32.totalorder %s659_s11, %s443_s27  ;;  %p446_p10 = scmp.lt.s32.totalorder %s444_s28, %s438_s26 }
  0x3f   : > { %p441_p13 = pneg %p440_p12 }
  0x40   : > { %p447_p2 = por %p446_p10, %p445_p7 }
  0x42   : > { %p448_p4 = pnand %p447_p2, %p441_p13 }
  0xca   : > { %v196_v7 = vpop.xlane.xlu0 %195 }
  0xcb   : > { %v197_v8 = vmul.f32 0.00390625, %v196_v7 }
  0xcd   : > { %v200_v9 = vmul.f32 %v198_v6, %v197_v8 }
  0xcf   : > { %v202_v10 = vsel %vm201_vm1, %v200_v9, 0.0 }
  0xd0   : > { %v203_v11 = vrot.slane %v202_v10, 4 }
  0xd2   : > { %v204_v12 = vadd.f32 %v203_v11, %v202_v10 }
  0xd4   : > { %v205_v13 = vrot.slane %v204_v12, 2 }
  0xd6   : > { %v206_v14 = vadd.f32 %v205_v13, %v204_v12 }
  0xd8   : > { %v207_v15 = vrot.slane %v206_v14, 1 }
  0xda   : > { %v208_v16 = vadd.f32 %v207_v15, %v206_v14 }
  0xdc   : > { %v341_v17 = vmul.f32 -1.442695, %v208_v16 }
  0xde   : > { %400 = vpow2.f32 %v341_v17 }
  0xe8   : > { %v401_v18 = vpop.eup %400 }
  0xe9   : > { %v212_v19 = vadd.f32 1.0, %v401_v18 }
  0xeb   : > { %402 = vrcp.f32 %v212_v19 }
  0xf5   : > { %v403_v20 = vpop.eup %402 }
  0xf6   : > { %v215_v21 = vmul.f32 %v403_v20, %v208_v16 }
  0xf8   : > { %218 = vperm.xlu0 %398, %v215_v21  }
 0x177   : > { %v219_v23 = vpop.permute.xlu0 %218 }
 0x178   : > { %v221_v24 = vmul.f32 %v219_v23, %v199_v22 }
 0x17a   : > { %v342_v25 = vmul.f32 -1.442695, %v221_v24 }
 0x17c   : > { %404 = vpow2.f32 %v342_v25 }
 0x186   : > { %v405_v26 = vpop.eup %404 }
 0x187   : > { %v226_v27 = vadd.f32 1.0, %v405_v26 }
 0x189   : > { %406 = vrcp.f32 %v226_v27 }
 0x193   : > { %v407_v31 = vpop.eup %406 }
 0x194   : > { %v232_v32 = vrot.slane %v407_v31, %v231_v30 }
 0x196   : > { %234 = vbcast.lane.b32.xlu1 %v232_v32, 256 }
 0x208   : > { %v235_v37 = vpop.permute.xlu1 %234 }
 0x209   : > { %v243_v38 = vrot.slane %v235_v37, %v242_v36 }
 0x20b   : > { %v245_v39 = vmul.f32 %v243_v38, %v187_v0 }
 0x20d   : > { %246 = vst [vmem:[%s186_s10] sm:$0xff] %v245_v39 }
 0x20e   : > { %451 = shalt.err (!%p448_p4)
}
 0x20f   : > { %s452_s29 = scalar_lea.hbm %s657_s20, 128  ;;  %s456_s7 = scalar_lea.hbm %s704_s3, 256 }
 0x210   : > { %p453_p5 = scmp.ne.s32.totalorder %s657_s20, %s452_s29  ;;  %p457_p0 = scmp.lt.u32.totalorder %s657_s20, %s704_s3 }
 0x211   : > { %p458_p1 = scmp.lt.u32.totalorder %s456_s7, %s452_s29  ;;  %p460_p6 = scmp.lt.u32.totalorder %s452_s29, %s657_s20 }
 0x212   : > { %p454_p8 = pnand %p453_p5, %p713_p11 }
 0x213   : > { %p459_p3 = por %p458_p1, %p457_p0 }
 0x214   : > { %p455_p9 = pneg %p454_p8 }
 0x215   : > { %p461_p12 = por %p460_p6, %p459_p3 }
 0x217   : > { %p462_p13 = pnand %p461_p12, %p455_p9 }
 0x219   : > { %465 = shalt.err (!%p462_p13)
}
 0x21a   : > { %352 = dma.vmem_to_hbm [thread:$0]  (%p713_p11), %s659_s11, 128, %s657_s20, %s248_s22  }
 0x21b PF: > { %s274_s23 = sand.u32 1, %s492_s12   ;;  %p714_p7 = scmp.ne.s32.totalorder %s709_s25, 0 }
 0x21c   : > { %p715_p10 = scmp.ge.s32.totalorder %s504_s15, 2  ;;  %s275_s8 = scalar_lea.sflag [#allocation4], %s274_s23 }
 0x21e   : > { %p359_p2 = pnand %p715_p10, %p714_p7 }
 0x220   : > { %487 = dma.done.wait (!%p359_p2), %s275_s8, 128  }
 0x221   : > { %489 = vsyncadd (!%p359_p2), %s275_s8, 4294967168  ;;  %p16_p4 = scmp.ge.s32.totalorder %s555_s18, 4   ;;  %s716_s12 = smov %s496_s13 }
 0x222   : > { %s717_s13 = smov %s500_s14  ;;  %s718_s14 = smov %s567_s21 }
 0x223   : > { %s719_s15 = smov %s555_s18  ;;  %18 = sbr.rel (!%p16_p4) target bundleno = 5 (0x5), region = 77 }
 0x22a   :  { %280 = vsyncpa [#allocation3], 1 }
 0x22b   :  { %282 = vsyncpa [#allocation3 + $0x1], 1 }
 0x22c   :  { %283 = vsyncpa [#allocation4], 1 }
 0x22d   :  { %285 = vsyncpa [#allocation4 + $0x1], 1 }

</bundles_post_ra>
